<compile_context>
chip_gen: v6e
topology: v6e:2x2x1
jax: 0.10.0
libtpu: 0.0.40
codegen_flags: <defaults>
</compile_context>

<pallas_src>
import functools

import jax
import jax.numpy as jnp
from jax.experimental import pallas as pl
from jax.experimental.pallas import tpu as pltpu


# ----------------------------- Pallas kernel ---------------------------------

def _dwt_kernel(x_ref, nt_ref, m_ref, out_ref, *, k, hp):
    # x_ref   : (k*hp, Wp)       k replicate-padded planes stacked along rows
    # nt_ref  : (Wp, 2*Wo)       horizontal strided filters [lo | hi], pre-transposed
    # m_ref   : (2*Ho, hp)       vertical strided filters   [lo ; hi]
    # out_ref : (k, 2*Ho, 2*Wo)  rows [lo;hi] x cols [lo|hi]  ->  [[ll|hl],[lh|hh]]
    x = x_ref[...]

    # Horizontal pass: one large MXU matmul over all k planes and both bands.
    t = jnp.dot(x, nt_ref[...], preferred_element_type=jnp.float32)    # (k*hp, 2*Wo)
    ncol = t.shape[-1]
    # hp is a multiple of 16 -> layout-preserving row split; cast after reshape.
    t = t.reshape(k, hp, ncol).astype(x.dtype)

    # Vertical pass: one batched contraction (filter shared by all k planes)
    # producing all four sub-bands at once.
    m = m_ref[...]                                                      # (2*Ho, hp)
    m_b = jnp.broadcast_to(m[None], (k,) + m.shape)
    dn = (((2,), (1,)), ((0,), (0,)))                                   # contract hp, batch k
    out = jax.lax.dot_general(m_b, t, dn, preferred_element_type=jnp.float32)
    out_ref[...] = out.astype(out_ref.dtype)


# ------------------------------ filter setup ---------------------------------

def _make_fb_lo_hi(fb_lo):
    """Replicates get_fb_conv's filter derivation (normalize, flip, sign, demean)."""
    nfil, flen = fb_lo.shape
    norm = jnp.maximum(jnp.linalg.norm(fb_lo, axis=-1, keepdims=True), 1e-12)
    lo = fb_lo / norm
    hi = lo[:, ::-1]
    sign = jnp.where(jnp.arange(flen) % 2 == 0, -1.0, 1.0).astype(lo.dtype)
    hi = hi * sign[None, :]
    hi = hi - hi.mean(axis=-1, keepdims=True)
    return lo, hi


def _strided_filter_matrix(filt, n_out, n_in):
    """filt: (nfil, flen) -> (nfil, n_out, n_in) with M[n, o, i] = filt[n, i - 2*o]."""
    nfil, flen = filt.shape
    o = jnp.arange(n_out)[:, None]
    i = jnp.arange(n_in)[None, :]
    idx = i - 2 * o
    valid = (idx >= 0) & (idx < flen)
    idxc = jnp.clip(idx, 0, flen - 1)
    vals = filt[:, idxc]                                   # (nfil, n_out, n_in)
    return jnp.where(valid[None, :, :], vals, 0.0).astype(jnp.float32)


def _choose_plane_block(n_planes, hp, wp, ho, wo, esize,
                        budget_bytes=20 * 1024 * 1024):
    """Pick planes-per-step K from the REAL per-step VMEM footprint, keep >= 2
    grid blocks (prefer an even count) so both v7x TensorCores get work."""
    ncol = 2 * wo

    def footprint(k):
        x_blk = 2 * k * hp * wp * esize                 # x block, double-buffered
        t_f32 = k * hp * ncol * 4                       # horizontal result (f32)
        t_lp = k * hp * ncol * esize if esize < 4 else 0
        m_bcast = k * 2 * ho * hp * esize               # broadcast vertical filters
        out_blk = 2 * k * 2 * ho * ncol * 4             # out block, double-buffered
        fil = 2 * (wp * ncol + 2 * ho * hp) * esize     # per-band filter blocks
        return x_blk + t_f32 + t_lp + m_bcast + out_blk + fil

    k = 1
    while k < n_planes and footprint(k + 1) <= budget_bytes:
        k += 1
    if n_planes >= 2:                                   # at least 2 grid blocks
        k = min(k, -(-n_planes // 2))
    nb = -(-n_planes // k)
    if nb > 1 and nb % 2 == 1:                          # prefer even block count
        for k2 in range(k - 1, 0, -1):
            nb2 = -(-n_planes // k2)
            if nb2 % 2 == 0:
                k, nb = k2, nb2
                break
    return k, nb, footprint(k)


# ------------------------------ public wrapper --------------------------------

@functools.partial(jax.jit, static_argnames=("pad_mode", "compute_dtype"))
def dwt_1lvl_pallas(x, fb_lo, pad_mode="edge", compute_dtype=jnp.bfloat16):
    """x: (B, C, H, W) f32, fb_lo: (nfil, flen).
    Returns [x_ll, (x_lh, x_hl, x_hh)], each (B, C*nfil, Ho, Wo) f32."""
    B, C, H, W = x.shape
    nfil, flen = fb_lo.shape
    esize = jnp.dtype(compute_dtype).itemsize

    pad = (2 * flen - 3) // 2
    # Matches PyTorch F.pad(x, [padl, padr, padt, padb]); extra odd-size pad goes
    # on the bottom (H) and the left (W).
    padt, padb = pad, pad + (1 if H % 2 != 0 else 0)
    padr, padl = pad, pad + (1 if W % 2 != 0 else 0)
    x_pad = jnp.pad(x, ((0, 0), (0, 0), (padt, padb), (padl, padr)), mode=pad_mode)

    Hp = H + padt + padb
    Wp = W + padl + padr
    Ho = (Hp - flen) // 2 + 1
    Wo = (Wp - flen) // 2 + 1
    Hp_pad = -(-Hp // 16) * 16          # sublane-tile safe for both f32 and bf16

    lo, hi = _make_fb_lo_hi(fb_lo.astype(jnp.float32))

    # Vertical strided filters stacked [lo ; hi]: (nfil, 2*Ho, Hp_pad)
    def _vert(filt):
        m = _strided_filter_matrix(filt, Ho, Hp)
        return jnp.pad(m, ((0, 0), (0, 0), (0, Hp_pad - Hp)))
    m_all = jnp.concatenate([_vert(lo), _vert(hi)], axis=1).astype(compute_dtype)

    # Horizontal strided filters, pre-transposed, concatenated [lo | hi]:
    # (nfil, Wp, 2*Wo)
    def _horz(filt):
        return jnp.transpose(_strided_filter_matrix(filt, Wo, Wp), (0, 2, 1))
    nt_all = jnp.concatenate([_horz(lo), _horz(hi)], axis=2).astype(compute_dtype)

    P = B * C
    K, num_blocks, footprint = _choose_plane_block(P, Hp_pad, Wp, Ho, Wo, esize)
    P_pad = num_blocks * K

    x_planes = x_pad.reshape(P, Hp, Wp)
    x_planes = jnp.pad(x_planes, ((0, P_pad - P), (0, Hp_pad - Hp), (0, 0)))
    x_rows = x_planes.astype(compute_dtype).reshape(P_pad * Hp_pad, Wp)

    out_shape = jax.ShapeDtypeStruct((P_pad, nfil, 2 * Ho, 2 * Wo), jnp.float32)

    flops_per_plane = 4 * Wo * (Hp_pad * Wp + 2 * Ho * Hp_pad)
    cost = pl.CostEstimate(
        flops=int(flops_per_plane) * int(P_pad) * int(nfil),
        transcendentals=0,
        bytes_accessed=int(x_rows.size * esize
                           + (m_all.size + nt_all.size) * esize
                           + P_pad * nfil * 4 * Ho * Wo * 4),
    )
    vmem_limit = int(min(48 * 1024 * 1024,
                         max(32 * 1024 * 1024, 2 * footprint + 8 * 1024 * 1024)))

    kernel = functools.partial(_dwt_kernel, k=K, hp=Hp_pad)

    out = pl.pallas_call(
        kernel,
        out_shape=out_shape,
        grid_spec=pltpu.PrefetchScalarGridSpec(
            num_scalar_prefetch=0,
            grid=(num_blocks, nfil),
            in_specs=[
                pl.BlockSpec((K * Hp_pad, Wp), lambda i, n: (i, 0)),
                pl.BlockSpec((None, Wp, 2 * Wo), lambda i, n: (n, 0, 0)),
                pl.BlockSpec((None, 2 * Ho, Hp_pad), lambda i, n: (n, 0, 0)),
            ],
            out_specs=pl.BlockSpec((K, None, 2 * Ho, 2 * Wo),
                                   lambda i, n: (i, n, 0, 0)),
        ),
        compiler_params=pltpu.CompilerParams(
            dimension_semantics=("parallel", "arbitrary"),
            vmem_limit_bytes=vmem_limit,
        ),
        cost_estimate=cost,
    )(x_rows, nt_all, m_all)

    # Split the concatenated slab into the four sub-bands (cheap XLA slices).
    def _band(rs, cs):
        y = out[:P, :, rs:rs + Ho, cs:cs + Wo]          # (P, nfil, Ho, Wo)
        return y.reshape(B, C * nfil, Ho, Wo)

    x_ll = _band(0, 0)
    x_hl = _band(0, Wo)
    x_lh = _band(Ho, 0)
    x_hh = _band(Ho, Wo)
    return [x_ll, (x_lh, x_hl, x_hh)]


# ------------------------ pure-JAX reference (for checking) -------------------

def dwt_1lvl_reference(x, fb_lo, pad_mode="edge"):
    B, C, H, W = x.shape
    nfil, flen = fb_lo.shape
    pad = (2 * flen - 3) // 2
    padt, padb = pad, pad + (1 if H % 2 != 0 else 0)
    padr, padl = pad, pad + (1 if W % 2 != 0 else 0)
    x_pad = jnp.pad(x, ((0, 0), (0, 0), (padt, padb), (padl, padr)), mode=pad_mode)

    lo, hi = _make_fb_lo_hi(fb_lo)
    fb_ll = jnp.einsum("nf,ng->nfg", lo, lo)
    fb_lh = jnp.einsum("nf,ng->nfg", hi, lo)
    fb_hl = jnp.einsum("nf,ng->nfg", lo, hi)
    fb_hh = jnp.einsum("nf,ng->nfg", hi, hi)
    fb = jnp.stack([fb_ll, fb_lh, fb_hl, fb_hh], axis=1).reshape(nfil * 4, flen, flen)
    fb = jnp.tile(fb, (C, 1, 1))[:, None]               # (C*nfil*4, 1, flen, flen)

    y = jax.lax.conv_general_dilated(
        x_pad, fb, window_strides=(2, 2), padding="VALID",
        dimension_numbers=("NCHW", "OIHW", "NCHW"), feature_group_count=C,
        precision=jax.lax.Precision.HIGHEST,
    )
    Ho, Wo = y.shape[-2], y.shape[-1]
    y = y.reshape(B, C * nfil, 4, Ho, Wo)
    return [y[:, :, 0], (y[:, :, 1], y[:, :, 2], y[:, :, 3])]


# ----------------------------------- main --------------------------------------

if __name__ == "__main__":
    key = jax.random.PRNGKey(0)
    k_x, k_f = jax.random.split(key)

    B, C, H, W = 2, 4, 16, 16
    nfil, flen = 1, 8

    x = jax.random.normal(k_x, (B, C, H, W), dtype=jnp.float32)
    # deterministic parameter init, matching torch.rand((nfil, flen)) - 0.5
    fb_lo = jax.random.uniform(k_f, (nfil, flen), dtype=jnp.float32) - 0.5

    ref_ll, (ref_lh, ref_hl, ref_hh) = dwt_1lvl_reference(x, fb_lo)
    refs = (ref_ll, ref_lh, ref_hl, ref_hh)

    # f32 compute path: tight parity with the PyTorch-equivalent conv reference.
    ll32, (lh32, hl32, hh32) = dwt_1lvl_pallas(x, fb_lo, compute_dtype=jnp.float32)
    jax.block_until_ready((ll32, lh32, hl32, hh32))
    for a, b in zip((ll32, lh32, hl32, hh32), refs):
        assert a.shape == b.shape, (a.shape, b.shape)
        err = float(jnp.max(jnp.abs(a - b)))
        assert err < 1e-3, err

    # bf16 compute path (default, MXU-native): looser tolerance.
    ll, (lh, hl, hh) = dwt_1lvl_pallas(x, fb_lo)
    jax.block_until_ready((ll, lh, hl, hh))
    for a, b in zip((ll, lh, hl, hh), refs):
        assert a.shape == b.shape, (a.shape, b.shape)
        err = float(jnp.max(jnp.abs(a - b)))
        assert err < 1e-1, err

    print("KERNEL_OK")
</pallas_src>

<mosaic_0001>
module attributes {stable_mosaic.version = 11 : i64} {
  func.func @_dwt_kernel(%arg0: i32, %arg1: i32, %arg2: memref<128x28xf32, #tpu.memory_space<vmem>>, %arg3: memref<1x28x22xf32, #tpu.memory_space<vmem>>, %arg4: memref<1x22x32xf32, #tpu.memory_space<vmem>>, %arg5: memref<4x1x22x22xf32, #tpu.memory_space<vmem>>) attributes {dimension_semantics = [#tpu.dimension_semantics<parallel>, #tpu.dimension_semantics<arbitrary>], iteration_bounds = array<i64: 2, 1>, scalar_prefetch = 0 : i64, scratch_operands = 0 : i64, tpu.core_type = #tpu.core_type<tc>, window_params = [{transform_indices = @transform_0, window_bounds = array<i64: 128, 28>}, {transform_indices = @transform_1, window_bounds = array<i64: 1, 28, 22>}, {transform_indices = @transform_2, window_bounds = array<i64: 1, 22, 32>}, {transform_indices = @transform_3, window_bounds = array<i64: 4, 1, 22, 22>}]} {
    %c0 = arith.constant 0 : index
    %c0_0 = arith.constant 0 : index
    %0 = vector.load %arg2[%c0, %c0_0] : memref<128x28xf32, #tpu.memory_space<vmem>>, vector<128x28xf32>
    %c0_1 = arith.constant 0 : index
    %c0_2 = arith.constant 0 : index
    %c0_3 = arith.constant 0 : index
    %1 = vector.load %arg3[%c0_1, %c0_2, %c0_3] : memref<1x28x22xf32, #tpu.memory_space<vmem>>, vector<1x28x22xf32>
    %2 = vector.shape_cast %1 : vector<1x28x22xf32> to vector<28x22xf32>
    %cst = arith.constant dense<0.000000e+00> : vector<128x22xf32>
    %3 = tpu.matmul %0, %2, %cst {dimension_numbers = #tpu.dot_dimension_numbers<[1], [0], [0], [1], [0, 0, 1, 1], [], []>} : vector<128x28xf32>, vector<28x22xf32>, vector<128x22xf32> -> vector<128x22xf32>
    %4 = vector.shape_cast %3 : vector<128x22xf32> to vector<4x32x22xf32>
    %c0_4 = arith.constant 0 : index
    %c0_5 = arith.constant 0 : index
    %c0_6 = arith.constant 0 : index
    %5 = vector.load %arg4[%c0_4, %c0_5, %c0_6] : memref<1x22x32xf32, #tpu.memory_space<vmem>>, vector<1x22x32xf32>
    %6 = vector.shape_cast %5 : vector<1x22x32xf32> to vector<22x32xf32>
    %7 = vector.shape_cast %6 : vector<22x32xf32> to vector<1x22x32xf32>
    %8 = vector.shape_cast %7 : vector<1x22x32xf32> to vector<1x22x32xf32>
    %9 = vector.broadcast %8 : vector<1x22x32xf32> to vector<4x22x32xf32>
    %cst_7 = arith.constant dense<0.000000e+00> : vector<4x22x22xf32>
    %10 = tpu.matmul %9, %4, %cst_7 {dimension_numbers = #tpu.dot_dimension_numbers<[2], [1], [1], [2], [0, 0, 0, 1, 1, 2], [0], [0]>} : vector<4x22x32xf32>, vector<4x32x22xf32>, vector<4x22x22xf32> -> vector<4x22x22xf32>
    %c0_8 = arith.constant 0 : index
    %c0_9 = arith.constant 0 : index
    %c0_10 = arith.constant 0 : index
    %c0_11 = arith.constant 0 : index
    %11 = vector.load %arg5[%c0_8, %c0_9, %c0_10, %c0_11] : memref<4x1x22x22xf32, #tpu.memory_space<vmem>>, vector<4x1x22x22xf32>
    %12 = vector.shape_cast %11 : vector<4x1x22x22xf32> to vector<4x22x22xf32>
    %13 = vector.shape_cast %10 : vector<4x22x22xf32> to vector<4x1x22x22xf32>
    tpu.vector_store %arg5[%c0_8, %c0_9, %c0_10, %c0_11], %13 {strides = array<i32>} : memref<4x1x22x22xf32, #tpu.memory_space<vmem>>, vector<4x1x22x22xf32>,
    return
  }
  func.func @transform_0(%arg0: i32, %arg1: i32) -> (i32, i32) {
    %c0_i32 = arith.constant 0 : i32
    %c0_i32_0 = arith.constant 0 : i32
    return %arg0, %c0_i32 : i32, i32
  }
  func.func @transform_1(%arg0: i32, %arg1: i32) -> (i32, i32, i32) {
    %c0_i32 = arith.constant 0 : i32
    %c0_i32_0 = arith.constant 0 : i32
    %c0_i32_1 = arith.constant 0 : i32
    return %arg1, %c0_i32, %c0_i32_0 : i32, i32, i32
  }
  func.func @transform_2(%arg0: i32, %arg1: i32) -> (i32, i32, i32) {
    %c0_i32 = arith.constant 0 : i32
    %c0_i32_0 = arith.constant 0 : i32
    %c0_i32_1 = arith.constant 0 : i32
    return %arg1, %c0_i32, %c0_i32_0 : i32, i32, i32
  }
  func.func @transform_3(%arg0: i32, %arg1: i32) -> (i32, i32, i32, i32) {
    %c0_i32 = arith.constant 0 : i32
    %c0_i32_0 = arith.constant 0 : i32
    %c0_i32_1 = arith.constant 0 : i32
    return %arg0, %arg1, %c0_i32, %c0_i32_0 : i32, i32, i32, i32
  }
}

</mosaic_0001>

<bundles_post_ra>
// kernel: reverse
= control target key start
LH: loop header
LB: loop body
LE: loop exit
PB: predicated region body
PF: predicated region fallthrough
CT: control target
= control target key end

     0   :  { %v2_v0 = vlaneseq  ;;  %s112_s0 = inlined_call_operand.vmem [shape: f32[1,8], index: 0, kind: input, shape index: {}]   ;;  %s113_s1 = inlined_call_operand.vmem [shape: f32[1,8], index: 1, kind: output, shape index: {}]  }
   0x2   :  { %v3_v1 = vsub.s32 7, %v2_v0 }
   0x4   :  { %4 = vset.pattern.permute.xlu0 %v3_v1 }
   0x5   :  { %v21_v2 = vld [vmem:[%s112_s0] sm:$0x1] }
   0x6   :  { %22 = vst [vmem:[#allocation1] sm:$0x1] %v21_v2 }
   0xd   :  { %v41_v3 = vld [vmem:[#allocation1] sm:$0x1] }
   0xe   :  { %42 = vst [vmem:[#allocation0] sm:$0x1] %v41_v3 }
  0x15   :  { %v43_v4 = vld [vmem:[#allocation0] sm:$0xff] }
  0x16   :  { %44 = vperm.xlu0 %4, %v43_v4  }
  0x91   :  { %v45_v5 = vpop.permute.xlu0 %44 }
  0x92   :  { %46 = vst [vmem:[#allocation2] sm:$0xff] %v45_v5 }
  0x99   :  { %v51_v6 = vld [vmem:[#allocation2] sm:$0x1] }
  0x9a   :  { %54 = vst [vmem:[#allocation3] sm:$0x1] %v51_v6 }
  0xa1   :  { %v71_v7 = vld [vmem:[#allocation3] sm:$0x1] }
  0xa2   :  { %72 = vst [vmem:[%s113_s1] sm:$0x1] %v71_v7 }

// kernel: dwt_1lvl_pallas.1
= control target key start
LH: loop header
LB: loop body
LE: loop exit
PB: predicated region body
PF: predicated region fallthrough
CT: control target
= control target key end

     0   :  { %s1191_s12 = smov 0   ;;  %s1193_s13 = smov 0   ;;  %s1365_s0 = inlined_call_operand.vmem [shape: f32[256,28], index: 0, kind: input, shape index: {}]   ;;  %s1366_s1 = inlined_call_operand.vmem [shape: f32[1,28,22], index: 1, kind: input, shape index: {}]   ;;  %s1367_s2 = inlined_call_operand.vmem [shape: f32[1,22,32], index: 2, kind: input, shape index: {}]   ;;  %s1368_s3 = inlined_call_operand.vmem [shape: f32[8,1,22,22], index: 3, kind: output, shape index: {}]  }
   0x1   :  { %s1195_s14 = smov 0  }
   0x2 LB: > { %s25_s15 = sadd.s32 1, %s1163_s13  ;;  %p926_p0 = scmp.ge.s32.totalorder %s1167_s14, 1  ;;  %s1167_s14 = sphi %s1195_s14, %s13_s14   ;;  %s1163_s13 = sphi %s1193_s13, %s1370_s13   ;;  %s1159_s12 = sphi %s1191_s12, %s1369_s12  }
   0x3   : > { %p27_p1 = scmp.ge.s32.totalorder %s25_s15, 2  ;;  %p172_p2 = scmp.lt.s32.totalorder %s1167_s14, 3 }
   0x5   : > { %s1372_s15 = smov (%p27_p1, %s25_s15), 0  ;;  %p173_p3 = pnand %p926_p0, %p172_p2 }
   0x6   : > { %s927_s20 = sshll.u32 (!%p173_p3), %s1159_s12, 4  ;;  %s929_s8 = sshll.u32 (!%p173_p3), %s1159_s12, 2 }
   0x7   : > { %176 = sbr.rel (%p173_p3) target bundleno = 456 (0x1c8), region = 32  ;;  %p212_p4 = scmp.lt.s32.totalorder (!%p173_p3), %s927_s20, 31 }
   0x8   : > { %p228_p5 = scmp.lt.s32.totalorder (!%p173_p3), %s929_s8, 7 }
   0xc   : > { %v257_v0 = vld [vmem:[%s1366_s1 + $0x18] sm:$0xf]  ;;  %vm307_vm0 = vcmask 1043456   ;;  %v256_v1 = vld [vmem:[%s1366_s1 + $0x10] sm:$0xff]  ;;  %v255_v2 = vld [vmem:[%s1366_s1 + $0x8] sm:$0xff]  ;;  %s1374_s20 = smov (!%p212_p4, %s927_s20), 31 }
   0xd   : > { %1010 = vmatprep.subr.msk.mxu0 %vm307_vm0, %v257_v0  ;;  %v254_v3 = vld [vmem:[%s1366_s1] sm:$0xff]  ;;  %s928_s25 = sshll.u32 %s1374_s20, 3  ;;  %vm258_vm1 = vcmask 228352   ;;  %v1169_v20 = vmov 0.0   ;;  %vm1170_vm2 = vmmov 0   ;;  %vm459_vm3 = vcmask 261120  }
   0xe   : > { %1011 = vmatpush3.msk.msra.mxu0 %vm307_vm0, %v257_v0  ;;  %s1227_s28 = scalar_lea.vmem %s1365_s0, %s928_s25  ;;  %1042 = vmatprep.subr.mxu1 %v1169_v20  ;;  %v456_v26 = vld [vmem:[%s1367_s2] sm:$0xff]  ;;  %v457_v29 = vld [vmem:[%s1367_s2 + $0x8] sm:$0xff]  ;;  %v458_v32 = vld [vmem:[%s1367_s2 + $0x10] sm:$0x3f]  ;;  %s1376_s8 = smov (!%p228_p5, %s929_s8), 7  ;;  %vm789_vm4 = vcmask 179200  }
   0xf   : > { %1012 = vmatprep.subr.mxu0 %v256_v1  ;;  %v238_v4 = vld [vmem:[%s1227_s28] sm:$0xff]  ;;  %v239_v5 = vld [vmem:[%s1227_s28 + $0x8] sm:$0xff]  ;;  %v240_v6 = vld [vmem:[%s1227_s28 + $0x10] sm:$0xff]  ;;  %1050 = vmatprep.mubr.msk.f32.mxu1 %vm1170_vm2, %v1169_v20  ;;  %s1118_s9 = smul.u32 24, %s1376_s8  ;;  %vm792_vm5 = vcmask 177152  }
  0x10   : > { %1013 = vmatpush3.msra.mxu0 %v256_v1  ;;  %1018 = vmatprep.mubr.msk.f32.mxu0 %vm258_vm1, %v238_v4  ;;  %v241_v7 = vld [vmem:[%s1227_s28 + $0x18] sm:$0xff]  ;;  %v242_v8 = vld [vmem:[%s1227_s28 + $0x20] sm:$0xff]  ;;  %v243_v9 = vld [vmem:[%s1227_s28 + $0x28] sm:$0xff] }
  0x11   : > { %1014 = vmatprep.subr.mxu0 %v255_v2  ;;  %v244_v10 = vld [vmem:[%s1227_s28 + $0x30] sm:$0xff]  ;;  %v245_v11 = vld [vmem:[%s1227_s28 + $0x38] sm:$0xff]  ;;  %v246_v12 = vld [vmem:[%s1227_s28 + $0x40] sm:$0xff]  ;;  %s1330_s16 = scalar_lea.vmem %s1368_s3, %s1118_s9 }
  0x12   : > { %1015 = vmatpush3.msra.mxu0 %v255_v2  ;;  %v247_v13 = vld [vmem:[%s1227_s28 + $0x48] sm:$0xff]  ;;  %v248_v14 = vld [vmem:[%s1227_s28 + $0x50] sm:$0xff]  ;;  %v249_v15 = vld [vmem:[%s1227_s28 + $0x58] sm:$0xff] }
  0x13   : > { %1016 = vmatprep.subr.mxu0 %v254_v3  ;;  %v250_v16 = vld [vmem:[%s1227_s28 + $0x60] sm:$0xff]  ;;  %v251_v17 = vld [vmem:[%s1227_s28 + $0x68] sm:$0xff]  ;;  %v252_v18 = vld [vmem:[%s1227_s28 + $0x70] sm:$0xff] }
  0x14   : > { %1017 = vmatpush3.msra.mxu0 %v254_v3  ;;  %v253_v19 = vld [vmem:[%s1227_s28 + $0x78] sm:$0xff] }
  0x15   : > { %1019 = vmatmul.mubr.msk.f32.vlgmr.msra.gmra.mxu0 %vm258_vm1, %v239_v5  ;;  %1093 = vmatprep.subr.mxu0 %v1169_v20 }
  0x16   : > { %1021 = vmatprep.mubr.msk.f32.mxu0 %vm258_vm1, %v240_v6 }
  0x19   : > { %1022 = vmatmul.mubr.msk.f32.gmra.mxu0 %vm258_vm1, %v241_v7 }
  0x1a   : > { %1024 = vmatprep.mubr.msk.f32.mxu0 %vm258_vm1, %v242_v8 }
  0x1d   : > { %1025 = vmatmul.mubr.msk.f32.gmra.mxu0 %vm258_vm1, %v243_v9 }
  0x1e   : > { %1027 = vmatprep.mubr.msk.f32.mxu0 %vm258_vm1, %v244_v10 }
  0x21   : > { %1028 = vmatmul.mubr.msk.f32.gmra.mxu0 %vm258_vm1, %v245_v11 }
  0x22   : > { %1030 = vmatprep.mubr.msk.f32.mxu0 %vm258_vm1, %v246_v12 }
  0x25   : > { %1031 = vmatmul.mubr.msk.f32.gmra.mxu0 %vm258_vm1, %v247_v13 }
  0x26   : > { %1033 = vmatprep.mubr.msk.f32.mxu0 %vm258_vm1, %v248_v14 }
  0x29   : > { %1034 = vmatmul.mubr.msk.f32.gmra.mxu0 %vm258_vm1, %v249_v15 }
  0x2a   : > { %1036 = vmatprep.mubr.msk.f32.mxu0 %vm258_vm1, %v250_v16 }
  0x2d   : > { %1037 = vmatmul.mubr.msk.f32.gmra.mxu0 %vm258_vm1, %v251_v17 }
  0x2e   : > { %1039 = vmatprep.mubr.msk.f32.mxu0 %vm258_vm1, %v252_v18 }
  0x31   : > { %1040 = vmatmul.mubr.msk.f32.gmra.mxu0 %vm258_vm1, %v253_v19 }
  0x32   : > { %1101 = vmatprep.mubr.msk.f32.mxu0 %vm1170_vm2, %v1169_v20 }
  0xd5   : > { %v1020_v21 = vpop.f32.mrf.mxu0 }
  0xd7   : > { %v377_v22 = vpop.f32.mrf.mxu0 }
  0xd9   : > { %v1023_v23 = vpop.f32.mrf.mxu0 }
  0xda   : > { %1043 = vmatpush3.msra.mxu1 %v1023_v23 }
  0xdb   : > { %v387_v24 = vpop.f32.mrf.mxu0  ;;  %1044 = vmatprep.subr.mxu1 %v1169_v20 }
  0xdc   : > { %1045 = vmatpush3.msra.mxu1 %v387_v24 }
  0xdd   : > { %v1026_v25 = vpop.f32.mrf.mxu0  ;;  %1046 = vmatprep.subr.mxu1 %v1169_v20 }
  0xde   : > { %1047 = vmatpush3.msra.mxu1 %v1020_v21 }
  0xdf   : > { %v397_v27 = vpop.f32.mrf.mxu0  ;;  %1048 = vmatprep.subr.mxu1 %v1169_v20 }
  0xe0   : > { %1049 = vmatpush3.msra.mxu1 %v377_v22 }
  0xe1   : > { %v1029_v28 = vpop.f32.mrf.mxu0  ;;  %1051 = vmatmul.mubr.msk.f32.vlgmr.msra.gmra.mxu1 %vm459_vm3, %v456_v26  ;;  %1059 = vmatprep.subr.mxu1 %v1169_v20 }
  0xe2   : > { %1060 = vmatpush3.msra.mxu1 %v1029_v28  ;;  %1053 = vmatprep.mubr.msk.f32.mxu1 %vm1170_vm2, %v1169_v20 }
  0xe3   : > { %v407_v30 = vpop.f32.mrf.mxu0  ;;  %1061 = vmatprep.subr.mxu1 %v1169_v20 }
  0xe4   : > { %1062 = vmatpush3.msra.mxu1 %v407_v30 }
  0xe5   : > { %v1032_v31 = vpop.f32.mrf.mxu0  ;;  %1054 = vmatmul.mubr.msk.f32.gmra.mxu1 %vm459_vm3, %v457_v29  ;;  %1063 = vmatprep.subr.mxu1 %v1169_v20 }
  0xe6   : > { %1064 = vmatpush3.msra.mxu1 %v1026_v25  ;;  %1056 = vmatprep.mubr.msk.f32.mxu1 %vm1170_vm2, %v1169_v20 }
  0xe7   : > { %v417_v33 = vpop.f32.mrf.mxu0  ;;  %1065 = vmatprep.subr.mxu1 %v1169_v20 }
  0xe8   : > { %1066 = vmatpush3.msra.mxu1 %v397_v27 }
  0xe9   : > { %v1035_v34 = vpop.f32.mrf.mxu0  ;;  %1057 = vmatmul.mubr.msk.f32.gmra.mxu1 %vm459_vm3, %v458_v32  ;;  %1076 = vmatprep.subr.mxu1 %v1169_v20 }
  0xea   : > { %1067 = vmatprep.mubr.msk.f32.mxu1 %vm1170_vm2, %v1169_v20 }
  0xeb   : > { %v427_v35 = vpop.f32.mrf.mxu0 }
  0xed   : > { %v1038_v36 = vpop.f32.mrf.mxu0  ;;  %1068 = vmatmul.mubr.msk.f32.vlgmr.msra.gmra.mxu1 %vm459_vm3, %v456_v26 }
  0xee   : > { %1077 = vmatpush3.msra.mxu1 %v1035_v34  ;;  %1070 = vmatprep.mubr.msk.f32.mxu1 %vm1170_vm2, %v1169_v20 }
  0xef   : > { %1078 = vmatprep.subr.mxu1 %v1169_v20  ;;  %v437_v37 = vpop.f32.mrf.mxu0 }
  0xf0   : > { %1079 = vmatpush3.msra.mxu1 %v427_v35 }
  0xf1   : > { %1080 = vmatprep.subr.mxu1 %v1169_v20  ;;  %v1041_v38 = vpop.f32.mrf.mxu0  ;;  %1071 = vmatmul.mubr.msk.f32.gmra.mxu1 %vm459_vm3, %v457_v29 }
  0xf2   : > { %1081 = vmatpush3.msra.mxu1 %v1032_v31  ;;  %1094 = vmatpush3.msra.mxu0 %v1041_v38 }
  0xf3   : > { %1082 = vmatprep.subr.mxu1 %v1169_v20  ;;  %v447_v39 = vpop.f32.mrf.mxu0  ;;  %1095 = vmatprep.subr.mxu0 %v1169_v20 }
  0xf4   : > { %1083 = vmatpush3.msra.mxu1 %v417_v33  ;;  %1073 = vmatprep.mubr.msk.f32.mxu1 %vm1170_vm2, %v1169_v20 }
  0xf5   : > { %1096 = vmatpush3.msra.mxu0 %v447_v39  ;;  %1074 = vmatmul.mubr.msk.f32.gmra.mxu1 %vm459_vm3, %v458_v32 }
  0xf6   : > { %1097 = vmatprep.subr.mxu0 %v1169_v20  ;;  %1084 = vmatprep.mubr.msk.f32.mxu1 %vm1170_vm2, %v1169_v20 }
  0xf7   : > { %1098 = vmatpush3.msra.mxu0 %v1038_v36  ;;  %1110 = vmatprep.subr.mxu1 %v1169_v20 }
  0xf8   : > { %1099 = vmatprep.subr.mxu0 %v1169_v20 }
  0xf9   : > { %1100 = vmatpush3.msra.mxu0 %v437_v37  ;;  %1085 = vmatmul.mubr.msk.f32.vlgmr.msra.gmra.mxu1 %vm459_vm3, %v456_v26 }
  0xfa   : > { %1114 = vmatpush3.msra.mxu1 %v1041_v38  ;;  %1087 = vmatprep.mubr.msk.f32.mxu1 %vm1170_vm2, %v1169_v20 }
  0xfb   : > { %1111 = vmatprep.subr.mxu1 %v1169_v20  ;;  %1102 = vmatmul.mubr.msk.f32.vlgmr.msra.gmra.mxu0 %vm459_vm3, %v456_v26 }
  0xfc   : > { %1115 = vmatpush3.msra.mxu1 %v447_v39  ;;  %1104 = vmatprep.mubr.msk.f32.mxu0 %vm1170_vm2, %v1169_v20 }
  0xfd   : > { %1112 = vmatprep.subr.mxu1 %v1169_v20  ;;  %1088 = vmatmul.mubr.msk.f32.gmra.mxu1 %vm459_vm3, %v457_v29 }
  0xfe   : > { %1116 = vmatpush3.msra.mxu1 %v1038_v36  ;;  %1090 = vmatprep.mubr.msk.f32.mxu1 %vm1170_vm2, %v1169_v20 }
  0xff   : > { %1113 = vmatprep.subr.mxu1 %v1169_v20  ;;  %1105 = vmatmul.mubr.msk.f32.gmra.mxu0 %vm459_vm3, %v457_v29 }
 0x100   : > { %1117 = vmatpush3.msra.mxu1 %v437_v37 }
 0x101   : > { %1091 = vmatmul.mubr.msk.f32.gmra.mxu1 %vm459_vm3, %v458_v32 }
 0x102   : > { %1107 = vmatprep.mubr.msk.f32.mxu1 %vm1170_vm2, %v1169_v20 }
 0x105   : > { %1108 = vmatmul.mubr.msk.f32.vlgmr.msra.gmra.mxu1 %vm459_vm3, %v458_v32 }
 0x1a1   : > { %v535_v40 = vpop.f32.mrf.mxu1 }
 0x1a2   : > { %790 = vst.msk [vmem:[%s1330_s16] sm:$0xff] %vm789_vm4, %v535_v40 }
 0x1a3   : > { %v1052_v41 = vpop.f32.mrf.mxu1 }
 0x1a5   : > { %v540_v42 = vpop.f32.mrf.mxu1 }
 0x1a6   : > { %791 = vst.msk [vmem:[%s1330_s16 + $0x8] sm:$0xff] %vm789_vm4, %v540_v42 }
 0x1a7   : > { %v1055_v43 = vpop.f32.mrf.mxu1 }
 0x1a9   : > { %v545_v44 = vpop.f32.mrf.mxu1 }
 0x1aa   : > { %793 = vst.msk [vmem:[%s1330_s16 + $0x10] sm:$0x3f] %vm792_vm5, %v545_v44 }
 0x1ab   : > { %v1058_v45 = vpop.f32.mrf.mxu1 }
 0x1ad   : > { %v615_v46 = vpop.f32.mrf.mxu1 }
 0x1ae   : > { %794 = vst.msk [vmem:[%s1330_s16 + $0x18] sm:$0xff] %vm789_vm4, %v615_v46 }
 0x1af   : > { %v1069_v47 = vpop.f32.mrf.mxu1 }
 0x1b1   : > { %v620_v48 = vpop.f32.mrf.mxu1 }
 0x1b2   : > { %795 = vst.msk [vmem:[%s1330_s16 + $0x20] sm:$0xff] %vm789_vm4, %v620_v48 }
 0x1b3   : > { %v1072_v49 = vpop.f32.mrf.mxu1 }
 0x1b5   : > { %v625_v50 = vpop.f32.mrf.mxu1 }
 0x1b6   : > { %796 = vst.msk [vmem:[%s1330_s16 + $0x28] sm:$0x3f] %vm792_vm5, %v625_v50 }
 0x1b7   : > { %v1075_v51 = vpop.f32.mrf.mxu1 }
 0x1b9   : > { %v695_v52 = vpop.f32.mrf.mxu1 }
 0x1ba   : > { %797 = vst.msk [vmem:[%s1330_s16 + $0x30] sm:$0xff] %vm789_vm4, %v695_v52 }
 0x1bb   : > { %v1086_v53 = vpop.f32.mrf.mxu1  ;;  %v775_v54 = vpop.f32.mrf.mxu0 }
 0x1bc   : > { %800 = vst.msk [vmem:[%s1330_s16 + $0x48] sm:$0xff] %vm789_vm4, %v775_v54 }
 0x1bd   : > { %v700_v55 = vpop.f32.mrf.mxu1  ;;  %v1103_v56 = vpop.f32.mrf.mxu0 }
 0x1be   : > { %798 = vst.msk [vmem:[%s1330_s16 + $0x38] sm:$0xff] %vm789_vm4, %v700_v55 }
 0x1bf   : > { %v1089_v57 = vpop.f32.mrf.mxu1  ;;  %v780_v58 = vpop.f32.mrf.mxu0 }
 0x1c0   : > { %801 = vst.msk [vmem:[%s1330_s16 + $0x50] sm:$0xff] %vm789_vm4, %v780_v58 }
 0x1c1   : > { %v705_v59 = vpop.f32.mrf.mxu1  ;;  %v1106_v60 = vpop.f32.mrf.mxu0 }
 0x1c2   : > { %799 = vst.msk [vmem:[%s1330_s16 + $0x40] sm:$0x3f] %vm792_vm5, %v705_v59 }
 0x1c3   : > { %v1092_v61 = vpop.f32.mrf.mxu1 }
 0x1c5   : > { %v785_v62 = vpop.f32.mrf.mxu1 }
 0x1c6   : > { %802 = vst.msk [vmem:[%s1330_s16 + $0x58] sm:$0x3f] %vm792_vm5, %v785_v62 }
 0x1c7   : > { %v1109_v63 = vpop.f32.mrf.mxu1 }
 0x1c8 PF: > { %s13_s14 = sadd.s32 1, %s1167_s14   ;;  %s1369_s12 = smov %s1163_s13 }
 0x1c9   : > { %p10_p6 = scmp.ge.s32.totalorder %s13_s14, 4   ;;  %s1370_s13 = smov %s1372_s15 }
 0x1cb   :  { %12 = sbr.rel (!%p10_p6) target bundleno = 2 (0x2), region = 68 }

</bundles_post_ra>
